<compile_context>
chip_gen: v7x
topology: tpu7x:2x2x1
jax: 0.10.0
libtpu: 0.0.40
codegen_flags: <defaults>
</compile_context>

<pallas_src>
import functools

import jax
import jax.numpy as jnp
from jax.experimental import pallas as pl
from jax.experimental.pallas import tpu as pltpu

# ----------------------------- sizes (small) -----------------------------
B = 8                          # batch
LATENT = 32                    # latent_dims
ACTION = 8                     # action_dims
OBS_EMBED = 64                 # obs_embed_dims
HIDDEN = 64                    # FCNet hidden width (per net)
SUFF = 2 * LATENT              # suff_stats_dims (mu, log_std) per net

IN_ROWS = LATENT + ACTION + OBS_EMBED   # 104 packed first-layer input rows
HID2 = 2 * HIDDEN                       # 128 packed hidden lanes (both nets)
STATS = 4 * LATENT                      # 128: [p_mu | q_mu | p_ls | q_ls]
SLAB = 2 * STATS                        # 256: [stats | states(+pad)]


# ------------------------------ Pallas kernel -----------------------------
def _fused_dynamics_kernel(prev_state_ref, prev_action_ref, obs_embed_ref,
                           noise_ref, w1_ref, w2_ref, bias_ref, out_ref):
    """Both FCNets (prior + posterior) + process_suff_stats in one body.

    w1 is block-diagonal: rows [0,40) -> prior cols [0,64), rows [40,104) ->
    posterior cols [64,128).  Row-block dots fold the torch.cat([prev_state,
    prev_action]) into the kernel and compute both hidden vectors at once.
    w2 columns are ordered [p_mu | q_mu | p_ls | q_ls] so one dot yields all
    sufficient statistics; a half-width lane roll aligns log_std with mu for
    the reparameterized sample.
    """
    # ---- layer 1 (both nets) ----
    h = (jnp.dot(prev_state_ref[...], w1_ref[0:LATENT, :],
                 preferred_element_type=jnp.float32)
         + jnp.dot(prev_action_ref[...], w1_ref[LATENT:LATENT + ACTION, :],
                   preferred_element_type=jnp.float32)
         + jnp.dot(obs_embed_ref[...], w1_ref[LATENT + ACTION:IN_ROWS, :],
                   preferred_element_type=jnp.float32)
         + bias_ref[0:1, :])
    # ELU; exp only sees the clamped-to-<=0 branch (no transient inf).
    h = jnp.where(h > 0.0, h, jnp.exp(jnp.minimum(h, 0.0)) - 1.0)

    # ---- layer 2 (both nets, one MXU pass) ----
    s = jnp.dot(h, w2_ref[...], preferred_element_type=jnp.float32) \
        + bias_ref[1:2, :]                           # [p_mu | q_mu | p_ls | q_ls]

    lane = jax.lax.broadcasted_iota(jnp.int32, s.shape, 1)
    is_ls = lane >= 2 * LATENT                       # lanes 64..127 = log_std
    s = jnp.where(is_ls, jnp.clip(s, -10.0, 10.0), s)

    # Bring clamped log_std over the mu lanes (shift = half width, so the roll
    # direction is irrelevant); mask the swapped-in mu lanes so exp stays tame.
    ls = pltpu.roll(s, shift=2 * LATENT, axis=1)
    ls = jnp.where(is_ls, -10.0, ls)
    state = s + jnp.exp(ls) * noise_ref[...]         # lanes 0..63 = [p_state|q_state]

    # Two 128-lane aligned, unmasked stores into one lane-dense slab.
    out_ref[:, 0:STATS] = s
    out_ref[:, STATS:SLAB] = state


def fused_dynamics_call(packed, prev_state, prev_action, obs_embed, noise):
    """Single grid-less pallas_call computing prior + posterior stats & samples."""
    bsz = prev_state.shape[0]
    vmem = pl.BlockSpec(memory_space=pltpu.MemorySpace.VMEM)
    return pl.pallas_call(
        _fused_dynamics_kernel,
        out_shape=jax.ShapeDtypeStruct((bsz, SLAB), jnp.float32),
        in_specs=[vmem] * 7,
        out_specs=vmem,
    )(prev_state, prev_action, obs_embed, noise,
      packed['w1'], packed['w2'], packed['bias'])


# --------------------------- Dynamics.forward -----------------------------
@functools.partial(jax.jit, static_argnames='deterministic')
def dynamics_forward(packed_params, prev_state_dict, prev_action, obs_embed,
                     key, deterministic=False):
    """Mirrors Dynamics.forward for the non-recurrent continuous config."""
    # imagine_step: mode or sample of the previous state distribution.
    prev_state = prev_state_dict['mu'] if deterministic else prev_state_dict['state']
    bsz = prev_state.shape[0]
    # One noise draw covers both networks (randn_like equivalents); lanes 0..31
    # feed the prior sample, 32..63 the posterior sample.
    noise = jax.random.normal(key, (bsz, STATS), jnp.float32)
    out = fused_dynamics_call(packed_params, prev_state, prev_action,
                              obs_embed, noise)
    L = LATENT
    # NOTE: in a larger pipeline keep the packed slab and slice at the consumer
    # to avoid extra tiny slice ops per call.
    prior = dict(mu=out[:, 0:L], log_std=out[:, 2 * L:3 * L],
                 state=out[:, 4 * L:5 * L])
    posterior = dict(mu=out[:, L:2 * L], log_std=out[:, 3 * L:4 * L],
                     state=out[:, 5 * L:6 * L])
    return prior, posterior


# TODO(synk): discrete (OneHotCategorical straight-through sample), recurrent
# (GRUCell) branches and the prev_action=None early-return of the module are
# not exercised by this config.

# -------------------------------- params -----------------------------------
def init_fcnet_params(key, d_in, d_hidden, d_out):
    k1, k2, k3, k4 = jax.random.split(key, 4)
    w1 = jax.random.normal(k1, (d_in, d_hidden), jnp.float32) / jnp.sqrt(d_in)
    b1 = 0.1 * jax.random.normal(k3, (d_hidden,), jnp.float32)
    w2 = jax.random.normal(k2, (d_hidden, d_out), jnp.float32) / jnp.sqrt(d_hidden)
    b2 = 0.1 * jax.random.normal(k4, (d_out,), jnp.float32)
    return (w1, b1, w2, b2)


def pack_params(prior_params, posterior_params):
    """One-time packing: block-diagonal w1 / w2 for both nets, second-layer
    columns reordered to [p_mu | q_mu | p_ls | q_ls], and all four bias vectors
    packed into one lane-dense (2, 128) slab."""
    w1p, b1p, w2p, b2p = prior_params        # (40,64), (64,), (64,64), (64,)
    w1q, b1q, w2q, b2q = posterior_params    # (64,64), (64,), (64,64), (64,)
    L, H = LATENT, HIDDEN

    w1 = jnp.zeros((IN_ROWS, HID2), jnp.float32)
    w1 = w1.at[0:L + ACTION, 0:H].set(w1p)
    w1 = w1.at[L + ACTION:IN_ROWS, H:2 * H].set(w1q)

    w2 = jnp.zeros((HID2, STATS), jnp.float32)
    w2 = w2.at[0:H, 0:L].set(w2p[:, 0:L])              # p_mu
    w2 = w2.at[0:H, 2 * L:3 * L].set(w2p[:, L:])       # p_log_std
    w2 = w2.at[H:, L:2 * L].set(w2q[:, 0:L])           # q_mu
    w2 = w2.at[H:, 3 * L:].set(w2q[:, L:])             # q_log_std

    bias = jnp.zeros((2, STATS), jnp.float32)
    bias = bias.at[0, 0:H].set(b1p)
    bias = bias.at[0, H:].set(b1q)
    bias = bias.at[1, 0:L].set(b2p[0:L])
    bias = bias.at[1, L:2 * L].set(b2q[0:L])
    bias = bias.at[1, 2 * L:3 * L].set(b2p[L:])
    bias = bias.at[1, 3 * L:].set(b2q[L:])
    return dict(w1=w1, w2=w2, bias=bias)


# --------------------------- pure-JAX reference ----------------------------
def _ref_net(x, params, noise):
    w1, b1, w2, b2 = params
    hp = jax.lax.Precision.HIGHEST
    h = jnp.dot(x, w1, precision=hp) + b1
    h = jnp.where(h > 0.0, h, jnp.exp(jnp.minimum(h, 0.0)) - 1.0)
    s = jnp.dot(h, w2, precision=hp) + b2
    mu = s[:, :LATENT]
    log_std = jnp.clip(s[:, LATENT:], -10.0, 10.0)
    return mu, log_std, mu + jnp.exp(log_std) * noise


if __name__ == "__main__":
    root = jax.random.PRNGKey(0)
    k_prior, k_post, k_state, k_act, k_obs, k_fwd = jax.random.split(root, 6)

    prior_params = init_fcnet_params(k_prior, LATENT + ACTION, HIDDEN, SUFF)
    post_params = init_fcnet_params(k_post, OBS_EMBED, HIDDEN, SUFF)
    packed = pack_params(prior_params, post_params)

    # initial_state(batch_size): mu = 0, log_std = 0, state = mu + exp(log_std)*randn
    init_mu = jnp.zeros((B, LATENT), jnp.float32)
    init_log_std = jnp.zeros((B, LATENT), jnp.float32)
    init_state = init_mu + jnp.exp(init_log_std) * jax.random.normal(
        k_state, (B, LATENT), jnp.float32)
    prev_state_dict = dict(mu=init_mu, log_std=init_log_std, state=init_state)

    prev_action = jax.random.normal(k_act, (B, ACTION), jnp.float32)
    obs_embed = jax.random.normal(k_obs, (B, OBS_EMBED), jnp.float32)

    prior, posterior = dynamics_forward(packed, prev_state_dict, prev_action,
                                        obs_embed, k_fwd)
    jax.block_until_ready(prior['state'])
    jax.block_until_ready(posterior['state'])

    # Verify against the pure-JAX reference using the exact same noise draws.
    noise = jax.random.normal(k_fwd, (B, STATS), jnp.float32)
    x_prior = jnp.concatenate([prev_state_dict['state'], prev_action], axis=-1)
    ref_p = _ref_net(x_prior, prior_params, noise[:, 0:LATENT])
    ref_q = _ref_net(obs_embed, post_params, noise[:, LATENT:2 * LATENT])

    for got, want in zip(
            (prior['mu'], prior['log_std'], prior['state'],
             posterior['mu'], posterior['log_std'], posterior['state']),
            (*ref_p, *ref_q)):
        err = float(jnp.max(jnp.abs(got - want)))
        assert jnp.allclose(got, want, atol=2e-4, rtol=2e-4), err

    print("KERNEL_OK")
</pallas_src>

<mosaic_0001>
module attributes {stable_mosaic.version = 11 : i64} {
  func.func @_fused_dynamics_kernel(%arg0: memref<8x32xf32, #tpu.memory_space<vmem>>, %arg1: memref<8x8xf32, #tpu.memory_space<vmem>>, %arg2: memref<8x64xf32, #tpu.memory_space<vmem>>, %arg3: memref<8x128xf32, #tpu.memory_space<vmem>>, %arg4: memref<104x128xf32, #tpu.memory_space<vmem>>, %arg5: memref<128x128xf32, #tpu.memory_space<vmem>>, %arg6: memref<2x128xf32, #tpu.memory_space<vmem>>, %arg7: memref<8x256xf32, #tpu.memory_space<vmem>>) attributes {dimension_semantics = [], scalar_prefetch = 0 : i64, scratch_operands = 0 : i64, tpu.core_type = #tpu.core_type<tc>} {
    %c0 = arith.constant 0 : index
    %c0_0 = arith.constant 0 : index
    %0 = vector.load %arg0[%c0, %c0_0] : memref<8x32xf32, #tpu.memory_space<vmem>>, vector<8x32xf32>
    %c0_1 = arith.constant 0 : index
    %c0_2 = arith.constant 0 : index
    %1 = vector.load %arg4[%c0_1, %c0_2] : memref<104x128xf32, #tpu.memory_space<vmem>>, vector<32x128xf32>
    %cst = arith.constant dense<0.000000e+00> : vector<8x128xf32>
    %2 = tpu.matmul %0, %1, %cst {dimension_numbers = #tpu.dot_dimension_numbers<[1], [0], [0], [1], [0, 0, 1, 1], [], []>} : vector<8x32xf32>, vector<32x128xf32>, vector<8x128xf32> -> vector<8x128xf32>
    %c0_3 = arith.constant 0 : index
    %c0_4 = arith.constant 0 : index
    %3 = vector.load %arg1[%c0_3, %c0_4] : memref<8x8xf32, #tpu.memory_space<vmem>>, vector<8x8xf32>
    %c32 = arith.constant 32 : index
    %c0_5 = arith.constant 0 : index
    %4 = vector.load %arg4[%c32, %c0_5] : memref<104x128xf32, #tpu.memory_space<vmem>>, vector<8x128xf32>
    %cst_6 = arith.constant dense<0.000000e+00> : vector<8x128xf32>
    %5 = tpu.matmul %3, %4, %cst_6 {dimension_numbers = #tpu.dot_dimension_numbers<[1], [0], [0], [1], [0, 0, 1, 1], [], []>} : vector<8x8xf32>, vector<8x128xf32>, vector<8x128xf32> -> vector<8x128xf32>
    %6 = arith.addf %2, %5 : vector<8x128xf32>
    %c0_7 = arith.constant 0 : index
    %c0_8 = arith.constant 0 : index
    %7 = vector.load %arg2[%c0_7, %c0_8] : memref<8x64xf32, #tpu.memory_space<vmem>>, vector<8x64xf32>
    %c40 = arith.constant 40 : index
    %c0_9 = arith.constant 0 : index
    %8 = vector.load %arg4[%c40, %c0_9] : memref<104x128xf32, #tpu.memory_space<vmem>>, vector<64x128xf32>
    %cst_10 = arith.constant dense<0.000000e+00> : vector<8x128xf32>
    %9 = tpu.matmul %7, %8, %cst_10 {dimension_numbers = #tpu.dot_dimension_numbers<[1], [0], [0], [1], [0, 0, 1, 1], [], []>} : vector<8x64xf32>, vector<64x128xf32>, vector<8x128xf32> -> vector<8x128xf32>
    %10 = arith.addf %6, %9 : vector<8x128xf32>
    %c0_11 = arith.constant 0 : index
    %c0_12 = arith.constant 0 : index
    %11 = vector.load %arg6[%c0_11, %c0_12] : memref<2x128xf32, #tpu.memory_space<vmem>>, vector<1x128xf32>
    %12 = vector.broadcast %11 : vector<1x128xf32> to vector<8x128xf32>
    %13 = arith.addf %10, %12 : vector<8x128xf32>
    %cst_13 = arith.constant 0.000000e+00 : f32
    %14 = vector.broadcast %cst_13 : f32 to vector<8x128xf32>
    %15 = arith.cmpf ogt, %13, %14 : vector<8x128xf32>
    %cst_14 = arith.constant 0.000000e+00 : f32
    %16 = vector.broadcast %cst_14 : f32 to vector<8x128xf32>
    %17 = arith.minimumf %13, %16 : vector<8x128xf32>
    %18 = math.exp %17 : vector<8x128xf32>
    %cst_15 = arith.constant 1.000000e+00 : f32
    %19 = vector.broadcast %cst_15 : f32 to vector<8x128xf32>
    %20 = arith.subf %18, %19 : vector<8x128xf32>
    %21 = arith.select %15, %13, %20 : vector<8x128xi1>, vector<8x128xf32>
    %c0_16 = arith.constant 0 : index
    %c0_17 = arith.constant 0 : index
    %22 = vector.load %arg5[%c0_16, %c0_17] : memref<128x128xf32, #tpu.memory_space<vmem>>, vector<128x128xf32>
    %cst_18 = arith.constant dense<0.000000e+00> : vector<8x128xf32>
    %23 = tpu.matmul %21, %22, %cst_18 {dimension_numbers = #tpu.dot_dimension_numbers<[1], [0], [0], [1], [0, 0, 1, 1], [], []>} : vector<8x128xf32>, vector<128x128xf32>, vector<8x128xf32> -> vector<8x128xf32>
    %c1 = arith.constant 1 : index
    %c0_19 = arith.constant 0 : index
    %24 = vector.load %arg6[%c1, %c0_19] : memref<2x128xf32, #tpu.memory_space<vmem>>, vector<1x128xf32>
    %25 = vector.broadcast %24 : vector<1x128xf32> to vector<8x128xf32>
    %26 = arith.addf %23, %25 : vector<8x128xf32>
    %27 = tpu.iota {dimensions = array<i32: 1>} : vector<8x128xi32>
    %c64_i32 = arith.constant 64 : i32
    %28 = vector.broadcast %c64_i32 : i32 to vector<8x128xi32>
    %29 = arith.cmpi sge, %27, %28 : vector<8x128xi32>
    %cst_20 = arith.constant -1.000000e+01 : f32
    %cst_21 = arith.constant 1.000000e+01 : f32
    %30 = vector.broadcast %cst_20 : f32 to vector<8x128xf32>
    %31 = arith.maximumf %30, %26 : vector<8x128xf32>
    %32 = vector.broadcast %cst_21 : f32 to vector<8x128xf32>
    %33 = arith.minimumf %32, %31 : vector<8x128xf32>
    %34 = arith.select %29, %33, %26 : vector<8x128xi1>, vector<8x128xf32>
    %c64_i32_22 = arith.constant 64 : i32
    %35 = tpu.dynamic_rotate %34 by %c64_i32_22 dim 1 : vector<8x128xf32>, i32 -> vector<8x128xf32>
    %cst_23 = arith.constant -1.000000e+01 : f32
    %36 = vector.broadcast %cst_23 : f32 to vector<8x128xf32>
    %37 = arith.select %29, %36, %35 : vector<8x128xi1>, vector<8x128xf32>
    %38 = math.exp %37 : vector<8x128xf32>
    %c0_24 = arith.constant 0 : index
    %c0_25 = arith.constant 0 : index
    %39 = vector.load %arg3[%c0_24, %c0_25] : memref<8x128xf32, #tpu.memory_space<vmem>>, vector<8x128xf32>
    %40 = arith.mulf %38, %39 : vector<8x128xf32>
    %41 = arith.addf %34, %40 : vector<8x128xf32>
    %c0_26 = arith.constant 0 : index
    %c0_27 = arith.constant 0 : index
    %42 = vector.load %arg7[%c0_26, %c0_27] : memref<8x256xf32, #tpu.memory_space<vmem>>, vector<8x128xf32>
    tpu.vector_store %arg7[%c0_26, %c0_27], %34 {strides = array<i32>} : memref<8x256xf32, #tpu.memory_space<vmem>>, vector<8x128xf32>,
    %c0_28 = arith.constant 0 : index
    %c128 = arith.constant 128 : index
    %43 = vector.load %arg7[%c0_28, %c128] : memref<8x256xf32, #tpu.memory_space<vmem>>, vector<8x128xf32>
    tpu.vector_store %arg7[%c0_28, %c128], %41 {strides = array<i32>} : memref<8x256xf32, #tpu.memory_space<vmem>>, vector<8x128xf32>,
    return
  }
}

</mosaic_0001>

<bundles_post_ra>
// kernel: dynamics_forward.1
= control target key start
LH: loop header
LB: loop body
LE: loop exit
PB: predicated region body
PF: predicated region fallthrough
CT: control target
= control target key end

     0   :  { %12 = vsyncpa [#allocation3], 0  ;;  %s744_s0 = inlined_call_operand.vmem [shape: f32[8,32], index: 0, kind: input, shape index: {}]   ;;  %s745_s1 = inlined_call_operand.vmem [shape: f32[8,8], index: 1, kind: input, shape index: {}]   ;;  %s746_s2 = inlined_call_operand.vmem [shape: f32[8,64], index: 2, kind: input, shape index: {}]   ;;  %s747_s3 = inlined_call_operand.vmem [shape: f32[8,128], index: 3, kind: input, shape index: {}]   ;;  %s748_s4 = inlined_call_operand.hbm [shape: f32[104,128], index: 4, kind: input, shape index: {}]   ;;  %s749_s5 = inlined_call_operand.hbm [shape: f32[128,128], index: 5, kind: input, shape index: {}]   ;;  %s750_s6 = inlined_call_operand.vmem [shape: f32[2,128], index: 6, kind: input, shape index: {}]   ;;  %s751_s7 = inlined_call_operand.vmem [shape: f32[8,256], index: 7, kind: output, shape index: {}]  }
   0x1   :  { %13 = vsyncpa [#allocation5], 0  ;;  %s630_s24 = smov [#allocation2]   ;;  %s582_s28 = scalar_lea.hbm %s748_s4, 1664 }
   0x2   :  { %s27_s25 = sshll.u32 %s630_s24, 4  ;;  %p583_p0 = scmp.ne.s32.totalorder %s748_s4, %s582_s28  ;;  %s28_s25 = int_to_ptr.vmem [resolvable:$true] %s27_s25 }
   0x3   :  { %p586_p1 = scmp.lt.u32.totalorder %s582_s28, %s748_s4 }
   0x5   :  { %p588_p2 = pnand %p586_p1, %p583_p0 }
   0x7   :  { %591 = shalt.err (!%p588_p2)
}
   0x8   :  { %s592_s10 = scalar_lea.vmem %s28_s25, 1664  ;;  %p597_p4 = scmp.lt.s32.totalorder %s28_s25, %s28_s25 }
   0x9   :  { %p593_p3 = scmp.ne.s32.totalorder %s28_s25, %s592_s10  ;;  %p598_p5 = scmp.lt.s32.totalorder %s592_s10, %s592_s10 }
   0xb   :  { %p599_p6 = por %p598_p5, %p597_p4 }
   0xd   :  { %p600_p7 = pnand %p599_p6, %p593_p3 }
   0xf   :  { %603 = shalt.err (!%p600_p7)
}
  0x10   :  { %s631_s11 = smov 128   ;;  %s632_s12 = smov 8  }
  0x11   :  { %33 = dma.hbm_to_vmem [thread:$0]  %s748_s4, 1664, %s28_s25, [#allocation3], %s631_s11, %s631_s11, %s632_s12  }
  0x12   :  { %s633_s15 = smov [#allocation4]   ;;  %s604_s19 = scalar_lea.hbm %s749_s5, 2048 }
  0x13   :  { %s39_s16 = sshll.u32 %s633_s15, 4  ;;  %p605_p8 = scmp.ne.s32.totalorder %s749_s5, %s604_s19  ;;  %s40_s16 = int_to_ptr.vmem [resolvable:$true] %s39_s16 }
  0x14   :  { %p608_p9 = scmp.lt.u32.totalorder %s604_s19, %s749_s5 }
  0x16   :  { %p610_p10 = pnand %p608_p9, %p605_p8 }
  0x18   :  { %613 = shalt.err (!%p610_p10)
}
  0x19   :  { %s614_s24 = scalar_lea.vmem %s40_s16, 2048  ;;  %p619_p12 = scmp.lt.s32.totalorder %s40_s16, %s40_s16 }
  0x1a   :  { %p615_p11 = scmp.ne.s32.totalorder %s40_s16, %s614_s24  ;;  %p620_p13 = scmp.lt.s32.totalorder %s614_s24, %s614_s24 }
  0x1c   :  { %p621_p0 = por %p620_p13, %p619_p12 }
  0x1e   :  { %p622_p1 = pnand %p621_p0, %p615_p11 }
  0x20   :  { %625 = shalt.err (!%p622_p1)
}
  0x21   :  { %45 = dma.hbm_to_vmem [thread:$0]  %s749_s5, 2048, %s40_s16, [#allocation5], %s631_s11, %s631_s11, %s632_s12  }
  0x22   :  { %626 = dma.done.wait [#allocation3], 1664  }
  0x23   :  { %627 = vsyncadd [#allocation3], 4294965632 }
  0x24   :  { %628 = dma.done.wait [#allocation5], 2048  }
  0x25   :  { %629 = vsyncadd [#allocation5], 4294965248  ;;  %v634_v0 = vmov 0.0   ;;  %vm635_vm0 = vmmov 0   ;;  %v636_v1 = vmov 0.0|0.0   ;;  %vm61_vm1 = vcmask 64512  }
  0x26   :  { %458 = vmatprep.subr.mxu0 %v634_v0  ;;  %460 = vmatprep.mubr.msk.f32.mxu0 %vm635_vm0, %v634_v0  ;;  %v60_v2 = vld [vmem:[#allocation2 + $0x20] sm:$0xff]  ;;  %v56_v5 = vld [vmem:[#allocation2 + $0x8] sm:$0xff]  ;;  %v57_v6 = vld [vmem:[#allocation2 + $0x10] sm:$0xff]  ;;  %vm135_vm2 = vcmask 261120   ;;  %vm218_vm3 = vcmask 523264   ;;  %v396_v63 = vlaneseq  ;;  %s637_s9 = smov 64  }
  0x27   :  { %546 = vmatprep.subr.bf16.mxu1 %v636_v1  ;;  %525 = vmatprep.mubr.msk.f32.mxu1 %vm635_vm0, %v634_v0  ;;  %v59_v3 = vld [vmem:[%s745_s1] sm:$0xff]  ;;  %v58_v7 = vld [vmem:[#allocation2 + $0x18] sm:$0xff]  ;;  %v210_v10 = vld [vmem:[#allocation2 + $0x28] sm:$0xff] }
  0x28   :  { %v55_v4 = vld [vmem:[#allocation2] sm:$0xff]  ;;  %459 = vmatpush3.msra.mxu0 %v60_v2  ;;  %v532_v9 = vpack.c.bf16 %v58_v7, %v57_v6  ;;  %v211_v11 = vld [vmem:[#allocation2 + $0x30] sm:$0xff]  ;;  %v212_v14 = vld [vmem:[#allocation2 + $0x38] sm:$0xff] }
  0x29   :  { %461 = vmatmul.mubr.msk.f32.vlgmr.msra.gmra.mrb[0].mxu0 %vm61_vm1, %v59_v3  ;;  %528 = vmatprep.subr.bf16.mxu0 %v636_v1  ;;  %v529_v8 = vpack.c.bf16 %v56_v5, %v55_v4  ;;  %v54_v12 = vld [vmem:[%s744_s0] sm:$0xff]  ;;  %v535_v13 = vpack.c.bf16 %v211_v11, %v210_v10  ;;  %v214_v17 = vld [vmem:[#allocation2 + $0x48] sm:$0xff]  ;;  %v215_v18 = vld [vmem:[#allocation2 + $0x50] sm:$0xff] }
  0x2a   :  { %471 = vmatprep.mubr.msk.f32.mxu0 %vm635_vm0, %v634_v0  ;;  %v213_v15 = vld [vmem:[#allocation2 + $0x40] sm:$0xff]  ;;  %v541_v19 = vpack.c.bf16 %v215_v18, %v214_v17  ;;  %v216_v20 = vld [vmem:[#allocation2 + $0x58] sm:$0xff]  ;;  %v305_v24 = vld [vmem:[#allocation4] sm:$0xff] }
  0x2b   :  { %530 = vmatpush3.bf16.msra.mxu0 %v529_v8  ;;  %v538_v16 = vpack.c.bf16 %v213_v15, %v212_v14  ;;  %v217_v21 = vld [vmem:[#allocation2 + $0x60] sm:$0xff]  ;;  %v306_v25 = vld [vmem:[#allocation4 + $0x8] sm:$0xff]  ;;  %v307_v26 = vld [vmem:[#allocation4 + $0x10] sm:$0xff] }
  0x2c   :  { %531 = vmatprep.subr.bf16.mxu0 %v636_v1  ;;  %v544_v22 = vpack.c.bf16 %v217_v21, %v216_v20  ;;  %v209_v23 = vld [vmem:[%s746_s2] sm:$0xff]  ;;  %v547_v27 = vpack.c.bf16 %v306_v25, %v305_v24  ;;  %v309_v30 = vld [vmem:[#allocation4 + $0x20] sm:$0xff]  ;;  %v310_v31 = vld [vmem:[#allocation4 + $0x28] sm:$0xff] }
  0x2d   :  { %v308_v28 = vld [vmem:[#allocation4 + $0x18] sm:$0xff]  ;;  %v553_v32 = vpack.c.bf16 %v310_v31, %v309_v30  ;;  %v311_v33 = vld [vmem:[#allocation4 + $0x30] sm:$0xff]  ;;  %v313_v36 = vld [vmem:[#allocation4 + $0x40] sm:$0xff] }
  0x2e   :  { %548 = vmatpush3.bf16.msra.mxu1 %v547_v27  ;;  %v550_v29 = vpack.c.bf16 %v308_v28, %v307_v26  ;;  %v312_v34 = vld [vmem:[#allocation4 + $0x38] sm:$0xff]  ;;  %v314_v37 = vld [vmem:[#allocation4 + $0x48] sm:$0xff]  ;;  %v315_v39 = vld [vmem:[#allocation4 + $0x50] sm:$0xff] }
  0x2f   :  { %533 = vmatpush3.bf16.msra.mxu0 %v532_v9  ;;  %549 = vmatprep.subr.bf16.mxu1 %v636_v1  ;;  %v556_v35 = vpack.c.bf16 %v312_v34, %v311_v33  ;;  %v559_v38 = vpack.c.bf16 %v314_v37, %v313_v36  ;;  %v316_v40 = vld [vmem:[#allocation4 + $0x58] sm:$0xff]  ;;  %v317_v41 = vld [vmem:[#allocation4 + $0x60] sm:$0xff]  ;;  %v318_v43 = vld [vmem:[#allocation4 + $0x68] sm:$0xff] }
  0x30   :  { %534 = vmatprep.subr.bf16.mxu0 %v636_v1  ;;  %v562_v42 = vpack.c.bf16 %v316_v40, %v315_v39  ;;  %v565_v44 = vpack.c.bf16 %v318_v43, %v317_v41  ;;  %v319_v45 = vld [vmem:[#allocation4 + $0x70] sm:$0xff]  ;;  %v320_v46 = vld [vmem:[#allocation4 + $0x78] sm:$0xff] }
  0x31   :  { %v568_v47 = vpack.c.bf16 %v320_v46, %v319_v45  ;;  %v421_v54 = vld [vmem:[%s750_s6] ss:$0 sm:$0xff] }
  0x32   :  { %472 = vmatmul.mubr.msk.f32.vlgmr.msra.gmra.mrb[2].mxu0 %vm135_vm2, %v54_v12  ;;  %551 = vmatpush3.bf16.msra.mxu1 %v550_v29  ;;  %v407_v10 = vld [vmem:[%s747_s3] sm:$0xff] }
  0x33   :  { %536 = vmatpush3.bf16.msra.mxu0 %v535_v13  ;;  %490 = vmatprep.mubr.msk.f32.mxu0 %vm635_vm0, %v634_v0  ;;  %v423_v0 = vld [vmem:[%s750_s6 + $0x1] ss:$0 sm:$0xff] }
  0x34   :  { %537 = vmatprep.subr.bf16.mxu0 %v636_v1  ;;  %552 = vmatprep.subr.bf16.mxu1 %v636_v1 }
  0x36   :  { %554 = vmatpush3.bf16.msra.mxu1 %v553_v32 }
  0x37   :  { %539 = vmatpush3.bf16.msra.mxu0 %v538_v16  ;;  %555 = vmatprep.subr.bf16.mxu1 %v636_v1 }
  0x38   :  { %540 = vmatprep.subr.bf16.mxu0 %v636_v1 }
  0x3a   :  { %557 = vmatpush3.bf16.msra.mxu1 %v556_v35 }
  0x3b   :  { %542 = vmatpush3.bf16.msra.mxu0 %v541_v19  ;;  %558 = vmatprep.subr.bf16.mxu1 %v636_v1 }
  0x3c   :  { %543 = vmatprep.subr.bf16.mxu0 %v636_v1 }
  0x3e   :  { %560 = vmatpush3.bf16.msra.mxu1 %v559_v38 }
  0x3f   :  { %545 = vmatpush3.bf16.msra.mxu0 %v544_v22  ;;  %561 = vmatprep.subr.bf16.mxu1 %v636_v1 }
  0x42   :  { %491 = vmatmul.mubr.msk.f32.vlgmr.msra.gmra.mrb[4].mxu0 %vm218_vm3, %v209_v23  ;;  %563 = vmatpush3.bf16.msra.mxu1 %v562_v42 }
  0x43   :  { %564 = vmatprep.subr.bf16.mxu1 %v636_v1 }
  0x46   :  { %566 = vmatpush3.bf16.msra.mxu1 %v565_v44 }
  0x47   :  { %567 = vmatprep.subr.bf16.mxu1 %v636_v1  ;;  %v397_v1 = vand.u32 127, %v396_v63 }
  0x49   :  { %vm398_vm5 = vcmp.ge.s32.totalorder %v397_v1, 64 }
  0x4a   :  { %569 = vmatpush3.bf16.msra.mxu1 %v568_v47 }
  0xfc   :  { %v131_v48 = vpop.f32.mrb[0].mxu0 }
  0xfd   :  { %v462_v49 = vpop.f32.mrb[1].mxu0 }
 0x105   :  { %v205_v50 = vpop.f32.mrb[2].mxu0 }
 0x106   :  { %v206_v51 = vadd.f32 %v205_v50, %v131_v48  ;;  %v473_v52 = vpop.f32.mrb[3].mxu0 }
 0x115   :  { %v288_v53 = vpop.f32.mrb[4].mxu0 }
 0x116   :  { %v292_v55 = vadd.f32 %v288_v53, %v206_v51  ;;  %v492_v56 = vpop.f32.mrb[5].mxu0 }
 0x118   :  { %v298_v57 = vadd.f32 %v421_v54, %v292_v55 }
 0x11a   :  { %v300_v58 = vmin.f32 %v298_v57, 0.0  ;;  %vm299_vm4 = vcmp.gt.f32.partialorder %v298_v57, 0.0 }
 0x11c   :  { %v301_v59 = vmul.f32 1.442695, %v300_v58 }
 0x11e   :  { %578 = vpow2.f32 %v301_v59 }
 0x128   :  { %v579_v60 = vpop.eup %578 }
 0x129   :  { %v422_v61 = vadd.f32 -1.0, %v579_v60 }
 0x12b   :  { %v304_v62 = vsel %vm299_vm4, %v298_v57, %v422_v61 }
 0x12c   :  { %526 = vmatmul.mubr.f32.vlgmr.msra.gmra.mrb[0].mxu1 %v304_v62 }
 0x1ff   :  { %v392_v2 = vpop.f32.mrb[0].mxu1 }
 0x200   :  { %v393_v3 = vadd.f32 %v423_v0, %v392_v2  ;;  %v527_v4 = vpop.f32.mrb[1].mxu1 }
 0x202   :  { %v424_v5 = vclamps-f32 %v393_v3, 10.0 }
 0x204   :  { %v401_v6 = vsel %vm398_vm5, %v424_v5, %v393_v3 }
 0x205   :  { %402 = vrot.lane.b32.xlu0 %v401_v6, %s637_s9  ;;  %410 = vst [vmem:[%s751_s7] sm:$0xff] %v401_v6 }
 0x277   :  { %v403_v7 = vpop.permute.xlu0 %402 }
 0x278   :  { %v404_v8 = vsel %vm398_vm5, -10.0, %v403_v7 }
 0x279   :  { %v405_v9 = vmul.f32 1.442695, %v404_v8 }
 0x27b   :  { %580 = vpow2.f32 %v405_v9 }
 0x285   :  { %v581_v11 = vpop.eup %580 }
 0x286   :  { %v408_v12 = vmul.f32 %v581_v11, %v407_v10 }
 0x288   :  { %v409_v13 = vadd.f32 %v408_v12, %v401_v6 }
 0x28a   :  { %411 = vst [vmem:[%s751_s7 + $0x8] sm:$0xff] %v409_v13 }
 0x28b   :  { %416 = vsyncpa [#allocation3], 1 }
 0x28c   :  { %417 = vsyncpa [#allocation5], 1 }

</bundles_post_ra>
